<compile_context>
chip_gen: v7x
topology: tpu7x:2x2x1
jax: 0.10.0
libtpu: 0.0.40
codegen_flags: <defaults>
</compile_context>

<pallas_src>
import functools

import jax
import jax.numpy as jnp
from jax.experimental import pallas as pl
from jax.experimental.pallas import tpu as pltpu


def _scale_kernel(scale_ref, x_ref, o_ref):
    # scale_ref: (1,) f32 in SMEM; x_ref/o_ref: lane-dense VMEM tiles.
    # Cast the scalar once to the input dtype so sub-32-bit inputs (bf16/int8)
    # are multiplied in their native packed layout (one vmul per packed vreg).
    o_ref[...] = x_ref[...] * scale_ref[0].astype(x_ref.dtype)


_LANE_WIDTHS = (4096, 2048, 1024, 512, 256, 128)
_TARGET_TILE_BYTES = 8 << 20     # ~8 MiB blocks: amortize per-grid-step overhead
_MULTI_STEP_MIN_BYTES = 2 << 20  # above this, force >= 2 grid steps (v7x: 2 TCs)
_SMALL_INPUT_BYTES = 1 << 20     # below this, a fused XLA multiply is cheaper
_RAGGED_C = 1024                 # lane width for the aligned prefix of ragged sizes


@functools.lru_cache(maxsize=1)
def _vmem_capacity_bytes() -> int:
    try:
        return int(pltpu.get_tpu_info().vmem_capacity_bytes)
    except Exception:
        return 64 << 20  # conservative default (v7x per-TensorCore VMEM)


def _scale_2d(flat: jax.Array, scale: jax.Array, donate_x: bool) -> jax.Array:
    """Pallas scale of a lane-dense 2-D slab (rows, C), C a multiple of 128."""
    rows, C = flat.shape
    itemsize = jnp.dtype(flat.dtype).itemsize
    row_bytes = C * itemsize
    total_bytes = rows * row_bytes

    # Generation-aware VMEM budget: v5e/v6e have 128 MiB physical VMEM, v7x 64 MiB.
    phys_vmem = _vmem_capacity_bytes()
    vmem_cap = (64 << 20) if phys_vmem >= (96 << 20) else (48 << 20)

    # Largest row-tile <= ~8 MiB, multiple of 32 sublanes (legal for f32/bf16/int8).
    max_tile_r = max(32, (_TARGET_TILE_BYTES // row_bytes) // 32 * 32)
    # Guarantee >= 2 grid steps for non-tiny inputs so the "parallel" axis can be
    # sharded across v7x's two TensorCores (no effect on v5e/v6e: 1 TC).
    if total_bytes > _MULTI_STEP_MIN_BYTES and rows > 32:
        half_rows = -(-rows // 2)               # ceil(rows / 2)
        half_rows = -(-half_rows // 32) * 32    # round up to a multiple of 32
        max_tile_r = min(max_tile_r, half_rows)
    tile_r = rows if rows <= max_tile_r else max_tile_r

    tile_bytes = tile_r * row_bytes
    # Double-buffered in + out tiles plus headroom, clamped per generation.
    vmem_limit = int(min(max(4 * tile_bytes + (8 << 20), 16 << 20), vmem_cap))

    return pl.pallas_call(
        _scale_kernel,
        out_shape=jax.ShapeDtypeStruct(flat.shape, flat.dtype),
        grid=(pl.cdiv(rows, tile_r),),
        in_specs=[
            pl.BlockSpec(memory_space=pltpu.SMEM),        # scalar parameter
            pl.BlockSpec((tile_r, C), lambda i: (i, 0)),  # x tile
        ],
        out_specs=pl.BlockSpec((tile_r, C), lambda i: (i, 0)),
        input_output_aliases=({1: 0} if donate_x else {}),
        compiler_params=pltpu.CompilerParams(
            dimension_semantics=("parallel",),            # v7x: shard over 2 TCs
            vmem_limit_bytes=vmem_limit,
        ),
        # TODO(synk): add pipeline_mode=pl.Buffered(3) on the x BlockSpec only if
        # an xprof trace shows exposed input DMA at step boundaries on v7x.
    )(scale, flat)


def scale_forward(x: jax.Array, scale: jax.Array, *, donate_x: bool = False,
                  min_kernel_bytes: int = _SMALL_INPUT_BYTES) -> jax.Array:
    """Elementwise multiply of `x` by the single-element parameter `scale` ((1,))."""
    orig_shape = x.shape
    n = x.size
    itemsize = jnp.dtype(x.dtype).itemsize
    scale_x = scale.astype(x.dtype)[0]

    # Small-input fast path: pallas_call launch + a single grid step costs more
    # than a fused XLA elementwise multiply for tiny tensors.
    if n == 0 or n * itemsize < min_kernel_bytes:
        return x * scale_x

    # Lane-dense layout: largest C in {4096..128} that divides n, preferring a
    # choice with rows >= 8 so every vreg uses all sublanes.
    C = None
    for c in _LANE_WIDTHS:
        if n % c == 0 and n // c >= 8:
            C = c
            break
    if C is None:
        for c in _LANE_WIDTHS:
            if n % c == 0:
                C = c
                break

    if C is not None:
        out = _scale_2d(x.reshape(n // C, C), scale, donate_x)
        return out.reshape(orig_shape)

    # Ragged element count: kernel on the aligned prefix, plain XLA multiply for
    # the (< 8 * _RAGGED_C element) tail.  Avoids the full-array pad + post-slice
    # of the previous version, which roughly tripled HBM traffic on this path.
    align = 8 * _RAGGED_C
    n_main = (n // align) * align
    x_flat = x.reshape(-1)
    if n_main == 0:
        return x * scale_x
    head = _scale_2d(x_flat[:n_main].reshape(n_main // _RAGGED_C, _RAGGED_C),
                     scale, donate_x)
    tail = x_flat[n_main:] * scale_x
    # TODO(synk): the concatenate still costs one extra pass over the output;
    # fusing the scale into its producer/consumer removes it entirely.
    return jnp.concatenate([head.reshape(-1), tail]).reshape(orig_shape)


if __name__ == "__main__":
    key = jax.random.PRNGKey(0)
    k1, k2, k3, k4 = jax.random.split(key, 4)

    # Deterministic parameter init, matching nn.Parameter(torch.FloatTensor([0.001]))
    scale_param = jnp.array([0.001], dtype=jnp.float32)

    # 1) Small NCHW input, forced through the Pallas kernel path.
    x1 = jax.random.normal(k1, (2, 4, 16, 16), dtype=jnp.float32)
    out1 = jax.block_until_ready(scale_forward(x1, scale_param, min_kernel_bytes=0))
    ref1 = x1 * scale_param[0]
    assert out1.shape == x1.shape and out1.dtype == x1.dtype
    assert jnp.allclose(out1, ref1, atol=1e-7, rtol=1e-6)

    # 2) Same input through the default small-input fast path.
    out1b = jax.block_until_ready(scale_forward(x1, scale_param))
    assert jnp.allclose(out1b, ref1, atol=1e-7, rtol=1e-6)

    # 3) Ragged element count -> aligned-prefix kernel + XLA tail.
    x2 = jax.random.normal(k2, (3, 5, 7, 101), dtype=jnp.float32)
    out2 = jax.block_until_ready(scale_forward(x2, scale_param, min_kernel_bytes=0))
    ref2 = x2 * scale_param[0]
    assert out2.shape == x2.shape and out2.dtype == x2.dtype
    assert jnp.allclose(out2, ref2, atol=1e-7, rtol=1e-6)

    # 4) Multi-MiB input -> pipelined grid with >= 2 steps (both v7x TCs stream).
    x3 = jax.random.normal(k3, (1, 64, 128, 128), dtype=jnp.float32)
    out3 = jax.block_until_ready(scale_forward(x3, scale_param))
    ref3 = x3 * scale_param[0]
    assert out3.shape == x3.shape and out3.dtype == x3.dtype
    assert jnp.allclose(out3, ref3, atol=1e-7, rtol=1e-6)

    # 5) bf16 activations: multiply stays in the packed native dtype.
    x4 = jax.random.normal(k4, (2, 4, 16, 16), dtype=jnp.bfloat16)
    out4 = jax.block_until_ready(scale_forward(x4, scale_param, min_kernel_bytes=0))
    ref4 = x4 * scale_param.astype(jnp.bfloat16)[0]
    assert out4.dtype == jnp.bfloat16
    assert jnp.allclose(out4.astype(jnp.float32), ref4.astype(jnp.float32),
                        atol=1e-3, rtol=1e-2)

    # 6) Aliased (donatable) input: output reuses the input HBM buffer.
    x5 = jax.random.normal(k1, (1, 64, 128, 128), dtype=jnp.float32)
    ref5 = x5 * scale_param[0]   # reference computed before the aliasing call
    out5 = jax.block_until_ready(scale_forward(x5, scale_param, donate_x=True))
    assert jnp.allclose(out5, ref5, atol=1e-7, rtol=1e-6)

    print("KERNEL_OK")
</pallas_src>

<mosaic_0001>
module attributes {stable_mosaic.version = 11 : i64} {
  func.func @_scale_kernel(%arg0: i32, %arg1: memref<1xf32, #tpu.memory_space<smem>>, %arg2: memref<8x256xf32, #tpu.memory_space<vmem>>, %arg3: memref<8x256xf32, #tpu.memory_space<vmem>>) attributes {dimension_semantics = [#tpu.dimension_semantics<parallel>], iteration_bounds = array<i64: 1>, scalar_prefetch = 0 : i64, scratch_operands = 0 : i64, tpu.core_type = #tpu.core_type<tc>, window_params = [{transform_indices = @transform_0, window_bounds = array<i64: 1>}, {transform_indices = @transform_1, window_bounds = array<i64: 8, 256>}, {transform_indices = @transform_2, window_bounds = array<i64: 8, 256>}]} {
    %c0 = arith.constant 0 : index
    %c0_0 = arith.constant 0 : index
    %0 = vector.load %arg2[%c0, %c0_0] : memref<8x256xf32, #tpu.memory_space<vmem>>, vector<8x256xf32>
    %c0_1 = arith.constant 0 : index
    %1 = memref.load %arg1[%c0_1] : memref<1xf32, #tpu.memory_space<smem>>
    %2 = vector.broadcast %1 : f32 to vector<8x256xf32>
    %3 = arith.mulf %0, %2 : vector<8x256xf32>
    %c0_2 = arith.constant 0 : index
    %c0_3 = arith.constant 0 : index
    %4 = vector.load %arg3[%c0_2, %c0_3] : memref<8x256xf32, #tpu.memory_space<vmem>>, vector<8x256xf32>
    tpu.vector_store %arg3[%c0_2, %c0_3], %3 {strides = array<i32>} : memref<8x256xf32, #tpu.memory_space<vmem>>, vector<8x256xf32>,
    return
  }
  func.func @transform_0(%arg0: i32) -> i32 {
    %c0_i32 = arith.constant 0 : i32
    %c0_i32_0 = arith.constant 0 : i32
    return %c0_i32 : i32
  }
  func.func @transform_1(%arg0: i32) -> (i32, i32) {
    %c0_i32 = arith.constant 0 : i32
    %c0_i32_0 = arith.constant 0 : i32
    return %arg0, %c0_i32 : i32, i32
  }
  func.func @transform_2(%arg0: i32) -> (i32, i32) {
    %c0_i32 = arith.constant 0 : i32
    %c0_i32_0 = arith.constant 0 : i32
    return %arg0, %c0_i32 : i32, i32
  }
}

</mosaic_0001>

<bundles_post_ra>
// kernel: tpu_custom_call.1
= control target key start
LH: loop header
LB: loop body
LE: loop exit
PB: predicated region body
PF: predicated region fallthrough
CT: control target
= control target key end

     0   :  { %8 = vsyncpa [#allocation4], 0  ;;  %s142_s0 = inlined_call_operand.<no memory space> [shape: f32[1], index: 0, kind: input, shape index: {}]   ;;  %s143_s1 = inlined_call_operand.hbm [shape: f32[8,256], index: 1, kind: input, shape index: {}]   ;;  %s144_s2 = inlined_call_operand.hbm [shape: f32[8,256], index: 2, kind: output, shape index: {}]  }
   0x1   :  { %9 = vsyncpa [#allocation5], 0  ;;  %s98_s9 = smov [#allocation3]   ;;  %s50_s13 = scalar_lea.hbm %s143_s1, 256 }
   0x2   :  { %s18_s10 = sshll.u32 %s98_s9, 4  ;;  %p51_p0 = scmp.ne.s32.totalorder %s143_s1, %s50_s13  ;;  %s19_s10 = int_to_ptr.vmem [resolvable:$true] %s18_s10 }
   0x3   :  { %p54_p1 = scmp.lt.u32.totalorder %s50_s13, %s143_s1 }
   0x5   :  { %p56_p2 = pnand %p54_p1, %p51_p0 }
   0x7   :  { %59 = shalt.err (!%p56_p2)
}
   0x8   :  { %s60_s18 = scalar_lea.vmem %s19_s10, 256  ;;  %p65_p4 = scmp.lt.s32.totalorder %s19_s10, %s19_s10 }
   0x9   :  { %p61_p3 = scmp.ne.s32.totalorder %s19_s10, %s60_s18  ;;  %p66_p5 = scmp.lt.s32.totalorder %s60_s18, %s60_s18 }
   0xb   :  { %p67_p6 = por %p66_p5, %p65_p4 }
   0xd   :  { %p68_p7 = pnand %p67_p6, %p61_p3 }
   0xf   :  { %71 = shalt.err (!%p68_p7)
}
  0x10   :  { %21 = dma.hbm_to_vmem [thread:$0]  %s143_s1, 256, %s19_s10, [#allocation4]  }
  0x11   :  { %94 = dma.done.wait [#allocation4], 256  }
  0x12   :  { %95 = vsyncadd [#allocation4], 4294967040  ;;  %v28_v0 = vstv %s142_s0  ;;  %s99_s23 = smov [#allocation6]   ;;  %v25_v1 = vld [vmem:[#allocation3] sm:$0xff]  ;;  %v26_v2 = vld [vmem:[#allocation3 + $0x8] sm:$0xff] }
  0x13   :  { %s39_s24 = sshll.u32 %s99_s23, 4  ;;  %v29_v3 = vmul.f32 %v28_v0, %v25_v1  ;;  %v30_v4 = vmul.f32 %v28_v0, %v26_v2  ;;  %s40_s24 = int_to_ptr.vmem [resolvable:$true] %s39_s24 }
  0x14   :  { %s72_s25 = scalar_lea.vmem %s40_s24, 256  ;;  %p77_p9 = scmp.lt.s32.totalorder %s40_s24, %s40_s24 }
  0x15   :  { %31 = vst [vmem:[#allocation6] sm:$0xff] %v29_v3  ;;  %32 = vst [vmem:[#allocation6 + $0x8] sm:$0xff] %v30_v4  ;;  %p73_p8 = scmp.ne.s32.totalorder %s40_s24, %s72_s25  ;;  %p78_p10 = scmp.lt.s32.totalorder %s72_s25, %s72_s25 }
  0x17   :  { %p79_p11 = por %p78_p10, %p77_p9 }
  0x19   :  { %p80_p12 = pnand %p79_p11, %p73_p8 }
  0x1b   :  { %83 = shalt.err (!%p80_p12)
}
  0x1c   :  { %s84_s0 = scalar_lea.hbm %s144_s2, 256 }
  0x1d   :  { %p85_p13 = scmp.ne.s32.totalorder %s144_s2, %s84_s0  ;;  %p88_p0 = scmp.lt.u32.totalorder %s84_s0, %s144_s2 }
  0x1f   :  { %p90_p1 = pnand %p88_p0, %p85_p13 }
  0x21   :  { %93 = shalt.err (!%p90_p1)
}
  0x22   :  { %42 = dma.vmem_to_hbm [thread:$0]  %s40_s24, 256, %s144_s2, [#allocation5]  }
  0x23   :  { %96 = dma.done.wait [#allocation5], 256  }
  0x24   :  { %97 = vsyncadd [#allocation5], 4294967040 }
  0x25   :  { %46 = vsyncpa [#allocation4], 1 }
  0x26   :  { %47 = vsyncpa [#allocation5], 1 }

</bundles_post_ra>
